<compile_context>
chip_gen: v7x
topology: tpu7x:2x2x1
jax: 0.10.0
libtpu: 0.0.40
codegen_flags: <defaults>
</compile_context>

<pallas_src>
import functools
import math

import numpy as np

import jax
import jax.numpy as jnp
from jax import lax
from jax.experimental import pallas as pl
from jax.experimental.pallas import tpu as pltpu

NUM_INPUT_CHANNELS = 3
NUM_ACTION_DIMS = 2
HEIGHT = 16
WIDTH = 16
LANE = 128

CONFIG = {
    "cnn_num_channels": [4],                 # conv1: 3 -> 4, conv2: 4 -> NUM_ACTION_DIMS
    "cnn_kernel_sizes": [(3, 3), (3, 3)],
    "cnn_strides": [(2, 2), (2, 2)],
    "cnn_activations": ["relu", "relu"],
    "fc_num_layers": 1,
    "fc_num_units": [32],
    "fc_activations": ["relu"],              # last FC layer has no activation (zip_longest)
}

_PI = float(np.pi)
_TAN_3PI_8 = 2.414213562373095
_TAN_PI_8 = 0.41421356237309503


def compute_output_shape(h_in, kernel_size, stride):
    # Conv2d, no padding, dilation=1 (utils.compute_output_shape)
    return (h_in - kernel_size) // stride + 1


def _round_up(n, m=LANE):
    return ((n + m - 1) // m) * m


# --------------------------------------------------------------------------
# In-kernel atan / atan2 (Cephes atanf; pure VPU ops, guaranteed to lower)
# --------------------------------------------------------------------------
def _atan_pos(t):
    """atan(t) for t >= 0 (f32), Cephes range reduction + odd polynomial."""
    big = t > _TAN_3PI_8
    mid = jnp.logical_and(jnp.logical_not(big), t > _TAN_PI_8)
    safe_big = jnp.where(big, t, 1.0)                      # keep unselected lanes finite
    z = jnp.where(big, -1.0 / safe_big,
                  jnp.where(mid, (t - 1.0) / (t + 1.0), t))
    bias = jnp.where(big, _PI / 2.0, jnp.where(mid, _PI / 4.0, 0.0))
    zz = z * z
    p = ((((8.05374449538e-2 * zz) - 1.38776856032e-1) * zz
          + 1.99777106478e-1) * zz - 3.33329491539e-1) * zz * z + z
    return bias + p


def _atan2(y, x):
    """Lane-wise atan2(y, x) matching torch.atan2 conventions (incl. atan2(0,0)=0)."""
    ay, ax = jnp.abs(y), jnp.abs(x)
    r = ay / jnp.where(ax == 0.0, 1.0, ax)
    a = _atan_pos(r)
    a = jnp.where(ax == 0.0, _PI / 2.0, a)
    a = jnp.where(x < 0.0, _PI - a, a)
    a = jnp.where(y < 0.0, -a, a)
    return jnp.where(jnp.logical_and(ax == 0.0, ay == 0.0), 0.0, a)


# --------------------------------------------------------------------------
# Fused Pallas kernel: whole forward pass on whole-array VMEM blocks.
# --------------------------------------------------------------------------
def _actor_fused_kernel(x_ref, w0_ref, wrest_ref, b_ref, o_ref, *, acts, rest_slices):
    """x_ref:(B,768) bf16, w0_ref:(768,256) bf16, wrest_ref:(640,128) bf16 (conv2,
    fc1, headA, headB stacked along rows), b_ref:(5,256) f32, o_ref:(B,128) f32.

    bf16 feeds only the MXU; bias-add / ReLU / head math stay f32 (v5e-safe).
    Output: col 0 = atan2(softsign(u), softsign(v)), col 1 = softplus(vel),
    cols >= 2 are forced to 0 (padding; never read back)."""
    # Layer 0 (conv1 as dense GEMM, 768 -> 256 padded)
    h = jnp.dot(x_ref[...], w0_ref[...], preferred_element_type=jnp.float32)
    h = h + b_ref[0:1, :]
    if acts[0] == "relu":
        h = jnp.maximum(h, 0.0)

    # Middle layers (conv2 as dense GEMM, then fc1), weights stacked in wrest.
    bi = 1
    for (r0, r1, _), act in zip(rest_slices[:-2], acts[1:]):
        h = jnp.dot(h.astype(jnp.bfloat16), wrest_ref[r0:r1, :],
                    preferred_element_type=jnp.float32)
        h = h + b_ref[bi:bi + 1, 0:LANE]
        if act == "relu":
            h = jnp.maximum(h, 0.0)
        bi += 1

    # Final FC layer, split into two lane-aligned heads so atan2 needs no
    # cross-lane movement:  zA lane0 = u logit, zA lane1 = velocity logit,
    # zB lane0 = v logit.
    hb = h.astype(jnp.bfloat16)
    a0, a1, _ = rest_slices[-2]
    c0, c1, _ = rest_slices[-1]
    zA = jnp.dot(hb, wrest_ref[a0:a1, :], preferred_element_type=jnp.float32) \
        + b_ref[bi:bi + 1, 0:LANE]
    zB = jnp.dot(hb, wrest_ref[c0:c1, :], preferred_element_type=jnp.float32) \
        + b_ref[bi + 1:bi + 2, 0:LANE]

    # Softsign (exact divide) and Softplus(beta=1, threshold=20), stable form.
    ssA = zA / (1.0 + jnp.abs(zA))
    ssB = zB / (1.0 + jnp.abs(zB))
    spA = jnp.where(zA > 20.0, zA,
                    jnp.maximum(zA, 0.0) + jnp.log1p(jnp.exp(-jnp.abs(zA))))
    angle = _atan2(ssA, ssB)                      # lane 0 = atan2(u_ss, v_ss)

    col = lax.broadcasted_iota(jnp.int32, zA.shape, 1)
    out = jnp.where(col == 0, angle, jnp.where(col == 1, spA, 0.0))
    o_ref[...] = out.astype(o_ref.dtype)


def actor_forward(packed, x, *, plan):
    """x: (B, C, H, W) NCHW f32. Returns (B, 2) = (angle, velocity)."""
    B = x.shape[0]
    Bp = _round_up(max(B, 1), 8)                           # full sublanes
    x_flat = x.reshape(B, -1).astype(jnp.float32)          # torch .view(B, -1) order
    d_in = plan["d_in"]                                    # 768 (already 128-aligned)
    x_flat = jnp.pad(x_flat, ((0, Bp - B), (0, d_in - x_flat.shape[1])))
    x_flat = x_flat.astype(jnp.bfloat16)                   # MXU input; halves input DMA

    w0, wrest, biases = packed["w0"], packed["wrest"], packed["biases"]
    flops = 2 * Bp * (w0.shape[0] * w0.shape[1] + wrest.shape[0] * wrest.shape[1])
    bytes_accessed = (w0.size * 2 + wrest.size * 2 + biases.size * 4
                      + x_flat.size * 2 + Bp * LANE * 4)

    kernel = functools.partial(_actor_fused_kernel,
                               acts=plan["acts"], rest_slices=plan["rest_slices"])
    out = pl.pallas_call(
        kernel,
        out_shape=jax.ShapeDtypeStruct((Bp, LANE), jnp.float32),
        in_specs=[pl.BlockSpec(memory_space=pltpu.MemorySpace.VMEM)] * 4,
        out_specs=pl.BlockSpec(memory_space=pltpu.MemorySpace.VMEM),
        cost_estimate=pl.CostEstimate(flops=flops,
                                      transcendentals=Bp * LANE * 4,
                                      bytes_accessed=bytes_accessed),
    )(x_flat, w0, wrest, biases)
    return out[:B, :NUM_ACTION_DIMS]


# --------------------------------------------------------------------------
# Parameters (deterministic, PyTorch-style uniform fan-in init, PyTorch layouts)
# --------------------------------------------------------------------------
def init_params(key, config):
    params = {"cnn": [], "fc": []}
    in_chs = [NUM_INPUT_CHANNELS] + config["cnn_num_channels"]
    out_chs = config["cnn_num_channels"] + [NUM_ACTION_DIMS]
    h, w = HEIGHT, WIDTH
    for cin, cout, ks, st in zip(in_chs, out_chs,
                                 config["cnn_kernel_sizes"], config["cnn_strides"]):
        key, k1, k2 = jax.random.split(key, 3)
        bound = 1.0 / math.sqrt(cin * ks[0] * ks[1])
        W = jax.random.uniform(k1, (cout, cin, ks[0], ks[1]), jnp.float32, -bound, bound)
        b = jax.random.uniform(k2, (cout,), jnp.float32, -bound, bound)
        params["cnn"].append((W, b, st))
        h = compute_output_shape(h, ks[0], st[0])
        w = compute_output_shape(w, ks[1], st[1])
    in_features = out_chs[-1] * h * w
    num_units = [in_features] + config["fc_num_units"] + [3]
    for fin, fout in zip(num_units[:-1], num_units[1:]):
        key, k1, k2 = jax.random.split(key, 3)
        bound = 1.0 / math.sqrt(fin)
        W = jax.random.uniform(k1, (fin, fout), jnp.float32, -bound, bound)   # x @ W layout
        b = jax.random.uniform(k2, (fout,), jnp.float32, -bound, bound)
        params["fc"].append((W, b))
    return params


# --------------------------------------------------------------------------
# One-time host preprocessing: conv -> dense GEMM, lane padding, bf16 packing
# --------------------------------------------------------------------------
def _conv_as_dense(W, b, in_shape, stride):
    """Fold Conv2d (valid padding) into a dense GEMM on the NCHW-flattened input:
    conv(x).reshape(-1) == x.reshape(-1) @ M + b_exp  (PyTorch .view order)."""
    C_out, C_in, kh, kw = W.shape
    _, H, Wd = in_shape
    sh, sw = stride
    Ho = compute_output_shape(H, kh, sh)
    Wo = compute_output_shape(Wd, kw, sw)
    Wn = np.asarray(W, dtype=np.float32)
    M = np.zeros((C_in * H * Wd, C_out * Ho * Wo), dtype=np.float32)
    for co in range(C_out):
        for ci in range(C_in):
            for i in range(kh):
                for j in range(kw):
                    for ho in range(Ho):
                        in_row = ci * H * Wd + (sh * ho + i) * Wd
                        out_row = co * Ho * Wo + ho * Wo
                        for wo in range(Wo):
                            M[in_row + sw * wo + j, out_row + wo] = Wn[co, ci, i, j]
    b_exp = np.repeat(np.asarray(b, dtype=np.float32), Ho * Wo)
    return M, b_exp, (C_out, Ho, Wo)


def preprocess_params(params, config):
    """Fold convs into dense GEMMs, pad every feature dim to 128 lanes, split the
    final FC layer into two lane-aligned heads (u/vel and v), and pack everything
    into three arrays: w0 (bf16), wrest (bf16, row-stacked), biases (f32)."""
    layers = []
    shape = (NUM_INPUT_CHANNELS, HEIGHT, WIDTH)
    for (W, b, stride) in params["cnn"]:
        M, b_exp, shape = _conv_as_dense(W, b, shape, stride)
        layers.append((M, b_exp))
    for (W, b) in params["fc"]:
        layers.append((np.asarray(W, np.float32), np.asarray(b, np.float32)))

    acts = list(config["cnn_activations"])
    fc_acts = list(config["fc_activations"])
    for i in range(len(params["fc"])):
        acts.append(fc_acts[i] if i < len(fc_acts) else "none")   # zip_longest semantics
    assert acts[-1] == "none", "final FC layer must be activation-free (head)"

    main_layers, main_acts = layers[:-1], acts[:-1]
    Wf, bf = layers[-1]                                   # (fin, 3): columns = (u, v, vel)
    assert Wf.shape[1] == 3

    # Layer 0 (conv1 Toeplitz) kept as its own blob (largest operand).
    M0, b0 = main_layers[0]
    d0_in, d0_out = _round_up(M0.shape[0]), _round_up(M0.shape[1])
    w0 = np.zeros((d0_in, d0_out), np.float32)
    w0[:M0.shape[0], :M0.shape[1]] = M0

    b_width = max(d0_out, LANE)
    bias_rows = [np.pad(b0, (0, b_width - b0.shape[0]))]

    # Remaining layers + the two final heads, padded to 128 lanes and row-stacked.
    rest_blocks, rest_slices = [], []
    row = 0
    for (M, b) in main_layers[1:]:
        rin, rout = _round_up(M.shape[0]), _round_up(M.shape[1])
        assert rout == LANE
        blk = np.zeros((rin, rout), np.float32)
        blk[:M.shape[0], :M.shape[1]] = M
        rest_blocks.append(blk)
        rest_slices.append((row, row + rin, rout))
        row += rin
        bias_rows.append(np.pad(b, (0, b_width - b.shape[0])))

    fin = Wf.shape[0]
    rin = _round_up(fin)
    blkA = np.zeros((rin, LANE), np.float32)              # head A: lane0 = u, lane1 = vel
    blkA[:fin, 0] = Wf[:, 0]
    blkA[:fin, 1] = Wf[:, 2]
    bA = np.zeros((b_width,), np.float32)
    bA[0], bA[1] = bf[0], bf[2]
    blkB = np.zeros((rin, LANE), np.float32)              # head B: lane0 = v
    blkB[:fin, 0] = Wf[:, 1]
    bB = np.zeros((b_width,), np.float32)
    bB[0] = bf[1]
    for blk, brow in ((blkA, bA), (blkB, bB)):
        rest_blocks.append(blk)
        rest_slices.append((row, row + rin, LANE))
        row += rin
        bias_rows.append(brow)

    packed = {
        "w0": jnp.asarray(w0, jnp.bfloat16),              # (768, 256)  bf16 MXU operand
        "wrest": jnp.asarray(np.concatenate(rest_blocks, axis=0), jnp.bfloat16),  # (640,128)
        "biases": jnp.asarray(np.stack(bias_rows, axis=0), jnp.float32),          # (5, 256)
    }
    plan = {"acts": tuple(main_acts), "rest_slices": tuple(rest_slices), "d_in": d0_in}
    return packed, plan


if __name__ == "__main__":
    key = jax.random.PRNGKey(0)
    pkey, xkey = jax.random.split(key)
    params = init_params(pkey, CONFIG)
    packed, plan = preprocess_params(params, CONFIG)

    x = jax.random.normal(xkey, (2, NUM_INPUT_CHANNELS, HEIGHT, WIDTH), jnp.float32)

    forward = jax.jit(functools.partial(actor_forward, plan=plan))
    out = jax.block_until_ready(forward(packed, x))
    assert out.shape == (2, NUM_ACTION_DIMS), out.shape
    assert bool(jnp.all(jnp.isfinite(out)))
    print("KERNEL_OK")
</pallas_src>

<mosaic_0001>
module attributes {stable_mosaic.version = 11 : i64} {
  func.func @_actor_fused_kernel(%arg0: memref<8x768xbf16, #tpu.memory_space<vmem>>, %arg1: memref<768x256xbf16, #tpu.memory_space<vmem>>, %arg2: memref<640x128xbf16, #tpu.memory_space<vmem>>, %arg3: memref<5x256xf32, #tpu.memory_space<vmem>>, %arg4: memref<8x128xf32, #tpu.memory_space<vmem>>) attributes {dimension_semantics = [], scalar_prefetch = 0 : i64, scratch_operands = 0 : i64, tpu.core_type = #tpu.core_type<tc>} {
    %c0 = arith.constant 0 : index
    %c0_0 = arith.constant 0 : index
    %0 = vector.load %arg0[%c0, %c0_0] : memref<8x768xbf16, #tpu.memory_space<vmem>>, vector<8x768xbf16>
    %c0_1 = arith.constant 0 : index
    %c0_2 = arith.constant 0 : index
    %1 = vector.load %arg1[%c0_1, %c0_2] : memref<768x256xbf16, #tpu.memory_space<vmem>>, vector<768x256xbf16>
    %cst = arith.constant dense<0.000000e+00> : vector<8x256xf32>
    %2 = tpu.matmul %0, %1, %cst {dimension_numbers = #tpu.dot_dimension_numbers<[1], [0], [0], [1], [0, 0, 1, 1], [], []>} : vector<8x768xbf16>, vector<768x256xbf16>, vector<8x256xf32> -> vector<8x256xf32>
    %c0_3 = arith.constant 0 : index
    %c0_4 = arith.constant 0 : index
    %3 = vector.load %arg3[%c0_3, %c0_4] : memref<5x256xf32, #tpu.memory_space<vmem>>, vector<1x256xf32>
    %4 = vector.broadcast %3 : vector<1x256xf32> to vector<8x256xf32>
    %5 = arith.addf %2, %4 : vector<8x256xf32>
    %cst_5 = arith.constant 0.000000e+00 : f32
    %6 = vector.broadcast %cst_5 : f32 to vector<8x256xf32>
    %7 = arith.maximumf %5, %6 : vector<8x256xf32>
    %8 = arith.truncf %7 : vector<8x256xf32> to vector<8x256xbf16>
    %c0_6 = arith.constant 0 : index
    %c0_7 = arith.constant 0 : index
    %9 = vector.load %arg2[%c0_6, %c0_7] : memref<640x128xbf16, #tpu.memory_space<vmem>>, vector<256x128xbf16>
    %cst_8 = arith.constant dense<0.000000e+00> : vector<8x128xf32>
    %10 = tpu.matmul %8, %9, %cst_8 {dimension_numbers = #tpu.dot_dimension_numbers<[1], [0], [0], [1], [0, 0, 1, 1], [], []>} : vector<8x256xbf16>, vector<256x128xbf16>, vector<8x128xf32> -> vector<8x128xf32>
    %c1 = arith.constant 1 : index
    %c0_9 = arith.constant 0 : index
    %11 = vector.load %arg3[%c1, %c0_9] : memref<5x256xf32, #tpu.memory_space<vmem>>, vector<1x128xf32>
    %12 = vector.broadcast %11 : vector<1x128xf32> to vector<8x128xf32>
    %13 = arith.addf %10, %12 : vector<8x128xf32>
    %cst_10 = arith.constant 0.000000e+00 : f32
    %14 = vector.broadcast %cst_10 : f32 to vector<8x128xf32>
    %15 = arith.maximumf %13, %14 : vector<8x128xf32>
    %16 = arith.truncf %15 : vector<8x128xf32> to vector<8x128xbf16>
    %c256 = arith.constant 256 : index
    %c0_11 = arith.constant 0 : index
    %17 = vector.load %arg2[%c256, %c0_11] : memref<640x128xbf16, #tpu.memory_space<vmem>>, vector<128x128xbf16>
    %cst_12 = arith.constant dense<0.000000e+00> : vector<8x128xf32>
    %18 = tpu.matmul %16, %17, %cst_12 {dimension_numbers = #tpu.dot_dimension_numbers<[1], [0], [0], [1], [0, 0, 1, 1], [], []>} : vector<8x128xbf16>, vector<128x128xbf16>, vector<8x128xf32> -> vector<8x128xf32>
    %c2 = arith.constant 2 : index
    %c0_13 = arith.constant 0 : index
    %19 = vector.load %arg3[%c2, %c0_13] : memref<5x256xf32, #tpu.memory_space<vmem>>, vector<1x128xf32>
    %20 = vector.broadcast %19 : vector<1x128xf32> to vector<8x128xf32>
    %21 = arith.addf %18, %20 : vector<8x128xf32>
    %cst_14 = arith.constant 0.000000e+00 : f32
    %22 = vector.broadcast %cst_14 : f32 to vector<8x128xf32>
    %23 = arith.maximumf %21, %22 : vector<8x128xf32>
    %24 = arith.truncf %23 : vector<8x128xf32> to vector<8x128xbf16>
    %c384 = arith.constant 384 : index
    %c0_15 = arith.constant 0 : index
    %25 = vector.load %arg2[%c384, %c0_15] : memref<640x128xbf16, #tpu.memory_space<vmem>>, vector<128x128xbf16>
    %cst_16 = arith.constant dense<0.000000e+00> : vector<8x128xf32>
    %26 = tpu.matmul %24, %25, %cst_16 {dimension_numbers = #tpu.dot_dimension_numbers<[1], [0], [0], [1], [0, 0, 1, 1], [], []>} : vector<8x128xbf16>, vector<128x128xbf16>, vector<8x128xf32> -> vector<8x128xf32>
    %c3 = arith.constant 3 : index
    %c0_17 = arith.constant 0 : index
    %27 = vector.load %arg3[%c3, %c0_17] : memref<5x256xf32, #tpu.memory_space<vmem>>, vector<1x128xf32>
    %28 = vector.broadcast %27 : vector<1x128xf32> to vector<8x128xf32>
    %29 = arith.addf %26, %28 : vector<8x128xf32>
    %c512 = arith.constant 512 : index
    %c0_18 = arith.constant 0 : index
    %30 = vector.load %arg2[%c512, %c0_18] : memref<640x128xbf16, #tpu.memory_space<vmem>>, vector<128x128xbf16>
    %cst_19 = arith.constant dense<0.000000e+00> : vector<8x128xf32>
    %31 = tpu.matmul %24, %30, %cst_19 {dimension_numbers = #tpu.dot_dimension_numbers<[1], [0], [0], [1], [0, 0, 1, 1], [], []>} : vector<8x128xbf16>, vector<128x128xbf16>, vector<8x128xf32> -> vector<8x128xf32>
    %c4 = arith.constant 4 : index
    %c0_20 = arith.constant 0 : index
    %32 = vector.load %arg3[%c4, %c0_20] : memref<5x256xf32, #tpu.memory_space<vmem>>, vector<1x128xf32>
    %33 = vector.broadcast %32 : vector<1x128xf32> to vector<8x128xf32>
    %34 = arith.addf %31, %33 : vector<8x128xf32>
    %35 = math.absf %29 : vector<8x128xf32>
    %cst_21 = arith.constant 1.000000e+00 : f32
    %36 = vector.broadcast %cst_21 : f32 to vector<8x128xf32>
    %37 = arith.addf %36, %35 : vector<8x128xf32>
    %38 = arith.divf %29, %37 : vector<8x128xf32>
    %39 = math.absf %34 : vector<8x128xf32>
    %cst_22 = arith.constant 1.000000e+00 : f32
    %40 = vector.broadcast %cst_22 : f32 to vector<8x128xf32>
    %41 = arith.addf %40, %39 : vector<8x128xf32>
    %42 = arith.divf %34, %41 : vector<8x128xf32>
    %cst_23 = arith.constant 2.000000e+01 : f32
    %43 = vector.broadcast %cst_23 : f32 to vector<8x128xf32>
    %44 = arith.cmpf ogt, %29, %43 : vector<8x128xf32>
    %cst_24 = arith.constant 0.000000e+00 : f32
    %45 = vector.broadcast %cst_24 : f32 to vector<8x128xf32>
    %46 = arith.maximumf %29, %45 : vector<8x128xf32>
    %47 = math.absf %29 : vector<8x128xf32>
    %cst_25 = arith.constant 0.000000e+00 : f32
    %48 = vector.broadcast %cst_25 : f32 to vector<8x128xf32>
    %49 = arith.subf %48, %47 : vector<8x128xf32>
    %50 = math.exp %49 : vector<8x128xf32>
    %51 = math.log1p %50 : vector<8x128xf32>
    %52 = arith.addf %46, %51 : vector<8x128xf32>
    %53 = arith.select %44, %29, %52 : vector<8x128xi1>, vector<8x128xf32>
    %54 = math.absf %38 : vector<8x128xf32>
    %55 = math.absf %42 : vector<8x128xf32>
    %cst_26 = arith.constant 0.000000e+00 : f32
    %56 = vector.broadcast %cst_26 : f32 to vector<8x128xf32>
    %57 = arith.cmpf oeq, %55, %56 : vector<8x128xf32>
    %cst_27 = arith.constant 1.000000e+00 : f32
    %58 = vector.broadcast %cst_27 : f32 to vector<8x128xf32>
    %59 = arith.select %57, %58, %55 : vector<8x128xi1>, vector<8x128xf32>
    %60 = arith.divf %54, %59 : vector<8x128xf32>
    %cst_28 = arith.constant 2.41421366 : f32
    %61 = vector.broadcast %cst_28 : f32 to vector<8x128xf32>
    %62 = arith.cmpf ogt, %60, %61 : vector<8x128xf32>
    %cst_29 = arith.constant dense<true> : vector<8x128xi1>
    %63 = arith.xori %62, %cst_29 : vector<8x128xi1>
    %cst_30 = arith.constant 0.414213568 : f32
    %64 = vector.broadcast %cst_30 : f32 to vector<8x128xf32>
    %65 = arith.cmpf ogt, %60, %64 : vector<8x128xf32>
    %66 = arith.andi %63, %65 : vector<8x128xi1>
    %cst_31 = arith.constant 1.000000e+00 : f32
    %67 = vector.broadcast %cst_31 : f32 to vector<8x128xf32>
    %68 = arith.select %62, %60, %67 : vector<8x128xi1>, vector<8x128xf32>
    %cst_32 = arith.constant -1.000000e+00 : f32
    %69 = vector.broadcast %cst_32 : f32 to vector<8x128xf32>
    %70 = arith.divf %69, %68 : vector<8x128xf32>
    %cst_33 = arith.constant 1.000000e+00 : f32
    %71 = vector.broadcast %cst_33 : f32 to vector<8x128xf32>
    %72 = arith.subf %60, %71 : vector<8x128xf32>
    %cst_34 = arith.constant 1.000000e+00 : f32
    %73 = vector.broadcast %cst_34 : f32 to vector<8x128xf32>
    %74 = arith.addf %60, %73 : vector<8x128xf32>
    %75 = arith.divf %72, %74 : vector<8x128xf32>
    %76 = arith.select %66, %75, %60 : vector<8x128xi1>, vector<8x128xf32>
    %77 = arith.select %62, %70, %76 : vector<8x128xi1>, vector<8x128xf32>
    %cst_35 = arith.constant 0.785398185 : f32
    %cst_36 = arith.constant 0.000000e+00 : f32
    %78 = vector.broadcast %cst_35 : f32 to vector<8x128xf32>
    %79 = vector.broadcast %cst_36 : f32 to vector<8x128xf32>
    %80 = arith.select %66, %78, %79 : vector<8x128xi1>, vector<8x128xf32>
    %cst_37 = arith.constant 1.57079637 : f32
    %81 = vector.broadcast %cst_37 : f32 to vector<8x128xf32>
    %82 = arith.select %62, %81, %80 : vector<8x128xi1>, vector<8x128xf32>
    %83 = arith.mulf %77, %77 : vector<8x128xf32>
    %cst_38 = arith.constant 0.0805374458 : f32
    %84 = vector.broadcast %cst_38 : f32 to vector<8x128xf32>
    %85 = arith.mulf %84, %83 : vector<8x128xf32>
    %cst_39 = arith.constant 0.138776854 : f32
    %86 = vector.broadcast %cst_39 : f32 to vector<8x128xf32>
    %87 = arith.subf %85, %86 : vector<8x128xf32>
    %88 = arith.mulf %87, %83 : vector<8x128xf32>
    %cst_40 = arith.constant 0.199777111 : f32
    %89 = vector.broadcast %cst_40 : f32 to vector<8x128xf32>
    %90 = arith.addf %88, %89 : vector<8x128xf32>
    %91 = arith.mulf %90, %83 : vector<8x128xf32>
    %cst_41 = arith.constant 0.333329499 : f32
    %92 = vector.broadcast %cst_41 : f32 to vector<8x128xf32>
    %93 = arith.subf %91, %92 : vector<8x128xf32>
    %94 = arith.mulf %93, %83 : vector<8x128xf32>
    %95 = arith.mulf %94, %77 : vector<8x128xf32>
    %96 = arith.addf %95, %77 : vector<8x128xf32>
    %97 = arith.addf %82, %96 : vector<8x128xf32>
    %cst_42 = arith.constant 0.000000e+00 : f32
    %98 = vector.broadcast %cst_42 : f32 to vector<8x128xf32>
    %99 = arith.cmpf oeq, %55, %98 : vector<8x128xf32>
    %cst_43 = arith.constant 1.57079637 : f32
    %100 = vector.broadcast %cst_43 : f32 to vector<8x128xf32>
    %101 = arith.select %99, %100, %97 : vector<8x128xi1>, vector<8x128xf32>
    %cst_44 = arith.constant 0.000000e+00 : f32
    %102 = vector.broadcast %cst_44 : f32 to vector<8x128xf32>
    %103 = arith.cmpf olt, %42, %102 : vector<8x128xf32>
    %cst_45 = arith.constant 3.14159274 : f32
    %104 = vector.broadcast %cst_45 : f32 to vector<8x128xf32>
    %105 = arith.subf %104, %101 : vector<8x128xf32>
    %106 = arith.select %103, %105, %101 : vector<8x128xi1>, vector<8x128xf32>
    %cst_46 = arith.constant 0.000000e+00 : f32
    %107 = vector.broadcast %cst_46 : f32 to vector<8x128xf32>
    %108 = arith.cmpf olt, %38, %107 : vector<8x128xf32>
    %cst_47 = arith.constant 0.000000e+00 : f32
    %109 = vector.broadcast %cst_47 : f32 to vector<8x128xf32>
    %110 = arith.subf %109, %106 : vector<8x128xf32>
    %111 = arith.select %108, %110, %106 : vector<8x128xi1>, vector<8x128xf32>
    %cst_48 = arith.constant 0.000000e+00 : f32
    %112 = vector.broadcast %cst_48 : f32 to vector<8x128xf32>
    %113 = arith.cmpf oeq, %55, %112 : vector<8x128xf32>
    %cst_49 = arith.constant 0.000000e+00 : f32
    %114 = vector.broadcast %cst_49 : f32 to vector<8x128xf32>
    %115 = arith.cmpf oeq, %54, %114 : vector<8x128xf32>
    %116 = arith.andi %113, %115 : vector<8x128xi1>
    %cst_50 = arith.constant 0.000000e+00 : f32
    %117 = vector.broadcast %cst_50 : f32 to vector<8x128xf32>
    %118 = arith.select %116, %117, %111 : vector<8x128xi1>, vector<8x128xf32>
    %119 = tpu.iota {dimensions = array<i32: 1>} : vector<8x128xi32>
    %c0_i32 = arith.constant 0 : i32
    %120 = vector.broadcast %c0_i32 : i32 to vector<8x128xi32>
    %121 = arith.cmpi eq, %119, %120 : vector<8x128xi32>
    %c1_i32 = arith.constant 1 : i32
    %122 = vector.broadcast %c1_i32 : i32 to vector<8x128xi32>
    %123 = arith.cmpi eq, %119, %122 : vector<8x128xi32>
    %cst_51 = arith.constant 0.000000e+00 : f32
    %124 = vector.broadcast %cst_51 : f32 to vector<8x128xf32>
    %125 = arith.select %123, %53, %124 : vector<8x128xi1>, vector<8x128xf32>
    %126 = arith.select %121, %118, %125 : vector<8x128xi1>, vector<8x128xf32>
    %c0_52 = arith.constant 0 : index
    %c0_53 = arith.constant 0 : index
    %127 = vector.load %arg4[%c0_52, %c0_53] : memref<8x128xf32, #tpu.memory_space<vmem>>, vector<8x128xf32>
    tpu.vector_store %arg4[%c0_52, %c0_53], %126 {strides = array<i32>} : memref<8x128xf32, #tpu.memory_space<vmem>>, vector<8x128xf32>,
    return
  }
}

</mosaic_0001>

<bundles_post_ra>
// kernel: actor_forward.1
= control target key start
LH: loop header
LB: loop body
LE: loop exit
PB: predicated region body
PF: predicated region fallthrough
CT: control target
= control target key end

     0   :  { %9 = vsyncpa [#allocation3], 0  ;;  %s2032_s0 = inlined_call_operand.vmem [shape: bf16[8,768], index: 0, kind: input, shape index: {}]   ;;  %s2033_s1 = inlined_call_operand.hbm [shape: bf16[768,256], index: 1, kind: input, shape index: {}]   ;;  %s2034_s2 = inlined_call_operand.hbm [shape: bf16[640,128], index: 2, kind: input, shape index: {}]   ;;  %s2035_s3 = inlined_call_operand.vmem [shape: f32[5,256], index: 3, kind: input, shape index: {}]   ;;  %s2036_s4 = inlined_call_operand.vmem [shape: f32[8,128], index: 4, kind: output, shape index: {}]  }
   0x1   :  { %10 = vsyncpa [#allocation5], 0  ;;  %s1877_s15 = smov [#allocation2]   ;;  %s1829_s19 = scalar_lea.hbm %s2033_s1, 12288 }
   0x2   :  { %s18_s16 = sshll.u32 %s1877_s15, 4  ;;  %p1830_p0 = scmp.ne.s32.totalorder %s2033_s1, %s1829_s19  ;;  %s19_s16 = int_to_ptr.vmem [resolvable:$true] %s18_s16 }
   0x3   :  { %p1833_p1 = scmp.lt.u32.totalorder %s1829_s19, %s2033_s1 }
   0x5   :  { %p1835_p2 = pnand %p1833_p1, %p1830_p0 }
   0x7   :  { %1838 = shalt.err (!%p1835_p2)
}
   0x8   :  { %s1839_s24 = scalar_lea.vmem %s19_s16, 12288  ;;  %p1844_p4 = scmp.lt.s32.totalorder %s19_s16, %s19_s16 }
   0x9   :  { %p1840_p3 = scmp.ne.s32.totalorder %s19_s16, %s1839_s24  ;;  %p1845_p5 = scmp.lt.s32.totalorder %s1839_s24, %s1839_s24 }
   0xb   :  { %p1846_p6 = por %p1845_p5, %p1844_p4 }
   0xd   :  { %p1847_p7 = pnand %p1846_p6, %p1840_p3 }
   0xf   :  { %1850 = shalt.err (!%p1847_p7)
}
  0x10   :  { %s1878_s25 = smov 128   ;;  %s1879_s26 = smov 8  }
  0x11   :  { %24 = dma.hbm_to_vmem [thread:$0]  %s2033_s1, 12288, %s19_s16, [#allocation3], %s1878_s25, %s1878_s25, %s1879_s26  }
  0x12   :  { %s1880_s29 = smov [#allocation4]   ;;  %s1851_s7 = scalar_lea.hbm %s2034_s2, 5120 }
  0x13   :  { %s30_s30 = sshll.u32 %s1880_s29, 4  ;;  %p1852_p8 = scmp.ne.s32.totalorder %s2034_s2, %s1851_s7  ;;  %s31_s30 = int_to_ptr.vmem [resolvable:$true] %s30_s30 }
  0x14   :  { %p1855_p9 = scmp.lt.u32.totalorder %s1851_s7, %s2034_s2 }
  0x16   :  { %p1857_p10 = pnand %p1855_p9, %p1852_p8 }
  0x18   :  { %1860 = shalt.err (!%p1857_p10)
}
  0x19   :  { %s1861_s12 = scalar_lea.vmem %s31_s30, 5120  ;;  %p1866_p12 = scmp.lt.s32.totalorder %s31_s30, %s31_s30 }
  0x1a   :  { %p1862_p11 = scmp.ne.s32.totalorder %s31_s30, %s1861_s12  ;;  %p1867_p13 = scmp.lt.s32.totalorder %s1861_s12, %s1861_s12 }
  0x1c   :  { %p1868_p0 = por %p1867_p13, %p1866_p12 }
  0x1e   :  { %p1869_p1 = pnand %p1868_p0, %p1862_p11 }
  0x20   :  { %1872 = shalt.err (!%p1869_p1)
}
  0x21   :  { %s1881_s1 = smov 64   ;;  %s1882_s13 = smov 4  }
  0x22   :  { %36 = dma.hbm_to_vmem [thread:$0]  %s2034_s2, 5120, %s31_s30, [#allocation5], %s1881_s1, %s1881_s1, %s1882_s13  }
  0x23   :  { %1873 = dma.done.wait [#allocation3], 12288  }
  0x24   :  { %1874 = vsyncadd [#allocation3], 4294955008 }
  0x25   :  { %1875 = dma.done.wait [#allocation5], 5120  }
  0x26   :  { %1876 = vsyncadd [#allocation5], 4294962176  ;;  %v1625_v0 = vld [vmem:[#allocation2 + $0x4] ss:$8 sps:$4 sm:$0xff]   ;;  %v1627_v1 = vld [vmem:[#allocation2] ss:$8 sps:$4 sm:$0xff]  }
  0x27   :  { %658 = vmatprep.subr.bf16.mxu0 %v1625_v0  ;;  %v1628_v2 = vld [vmem:[#allocation2 + $0x14] ss:$8 sps:$4 sm:$0xff]   ;;  %v1630_v3 = vld [vmem:[#allocation2 + $0x10] ss:$8 sps:$4 sm:$0xff]   ;;  %v1631_v4 = vld [vmem:[#allocation2 + $0x24] ss:$8 sps:$4 sm:$0xff]  }
  0x28   :  { %659 = vmatpush1.bf16.msra.mxu0 %v1627_v1  ;;  %v1633_v5 = vld [vmem:[#allocation2 + $0x20] ss:$8 sps:$4 sm:$0xff]   ;;  %v1634_v6 = vld [vmem:[#allocation2 + $0x34] ss:$8 sps:$4 sm:$0xff]   ;;  %v1636_v7 = vld [vmem:[#allocation2 + $0x30] ss:$8 sps:$4 sm:$0xff]  }
  0x29   :  { %660 = vmatprep.subr.bf16.mxu0 %v1628_v2  ;;  %v1637_v8 = vld [vmem:[#allocation2 + $0x44] ss:$8 sps:$4 sm:$0xff]   ;;  %v1639_v9 = vld [vmem:[#allocation2 + $0x40] ss:$8 sps:$4 sm:$0xff]   ;;  %v1640_v10 = vld [vmem:[#allocation2 + $0x54] ss:$8 sps:$4 sm:$0xff]  }
  0x2a   :  { %v1642_v11 = vld [vmem:[#allocation2 + $0x50] ss:$8 sps:$4 sm:$0xff]   ;;  %v1643_v12 = vld [vmem:[#allocation2 + $0x64] ss:$8 sps:$4 sm:$0xff]   ;;  %v1645_v15 = vld [vmem:[#allocation2 + $0x60] ss:$8 sps:$4 sm:$0xff]  }
  0x2b   :  { %v46_v13 = vld [vmem:[%s2032_s0] sm:$0xff]  ;;  %v1646_v16 = vld [vmem:[#allocation2 + $0x74] ss:$8 sps:$4 sm:$0xff]   ;;  %v1648_v17 = vld [vmem:[#allocation2 + $0x70] ss:$8 sps:$4 sm:$0xff]   ;;  %vm1884_vm0 = vmmov 0  }
  0x2c   :  { %661 = vmatpush1.bf16.msra.mxu0 %v1630_v3  ;;  %v1353_v14 = vcombine.high %v46_v13, %v46_v13  ;;  %v1649_v18 = vld [vmem:[#allocation2 + $0x84] ss:$8 sps:$4 sm:$0xff]   ;;  %v1651_v19 = vld [vmem:[#allocation2 + $0x80] ss:$8 sps:$4 sm:$0xff]   ;;  %v1652_v20 = vld [vmem:[#allocation2 + $0x94] ss:$8 sps:$4 sm:$0xff]   ;;  %v1352_v36 = vcombine.low %v46_v13, %v46_v13 }
  0x2d   :  { %662 = vmatprep.subr.bf16.mxu0 %v1631_v4  ;;  %v1654_v21 = vld [vmem:[#allocation2 + $0x90] ss:$8 sps:$4 sm:$0xff]   ;;  %v1655_v22 = vld [vmem:[#allocation2 + $0xa4] ss:$8 sps:$4 sm:$0xff]   ;;  %v1657_v23 = vld [vmem:[#allocation2 + $0xa0] ss:$8 sps:$4 sm:$0xff]  }
  0x2e   :  { %690 = vmatprep.mubr.bf16.mxu0 %v1353_v14  ;;  %v1658_v24 = vld [vmem:[#allocation2 + $0xb4] ss:$8 sps:$4 sm:$0xff]   ;;  %v1660_v25 = vld [vmem:[#allocation2 + $0xb0] ss:$8 sps:$4 sm:$0xff]   ;;  %v1661_v26 = vld [vmem:[#allocation2 + $0xc4] ss:$8 sps:$4 sm:$0xff]  }
  0x2f   :  { %v1663_v27 = vld [vmem:[#allocation2 + $0xc0] ss:$8 sps:$4 sm:$0xff]   ;;  %v1664_v28 = vld [vmem:[#allocation2 + $0xd4] ss:$8 sps:$4 sm:$0xff]   ;;  %v1666_v29 = vld [vmem:[#allocation2 + $0xd0] ss:$8 sps:$4 sm:$0xff]  }
  0x30   :  { %663 = vmatpush1.bf16.msra.mxu0 %v1633_v5  ;;  %v1667_v30 = vld [vmem:[#allocation2 + $0xe4] ss:$8 sps:$4 sm:$0xff]   ;;  %v1669_v31 = vld [vmem:[#allocation2 + $0xe0] ss:$8 sps:$4 sm:$0xff]   ;;  %v1670_v32 = vld [vmem:[#allocation2 + $0xf4] ss:$8 sps:$4 sm:$0xff]  }
  0x31   :  { %664 = vmatprep.subr.bf16.mxu0 %v1634_v6  ;;  %v1672_v33 = vld [vmem:[#allocation2 + $0xf0] ss:$8 sps:$4 sm:$0xff]   ;;  %v1677_v34 = vld [vmem:[#allocation2 + $0x104] ss:$8 sps:$4 sm:$0xff]   ;;  %v1675_v37 = vld [vmem:[#allocation2 + $0x100] ss:$8 sps:$4 sm:$0xff]  }
  0x32   :  { %v1941_v35 = vld [vmem:[%s2032_s0 + $0x8] sm:$0xff]  ;;  %v1680_v39 = vld [vmem:[#allocation2 + $0x114] ss:$8 sps:$4 sm:$0xff]   ;;  %v1678_v40 = vld [vmem:[#allocation2 + $0x110] ss:$8 sps:$4 sm:$0xff]   ;;  %vm1885_vm7 = vmmov 1  }
  0x33   :  { %v1355_v38 = vcombine.high %v1941_v35, %v1941_v35  ;;  %v1775_v41 = vld [vmem:[#allocation4 + $0x40] sm:$0xff]   ;;  %v1777_v43 = vld [vmem:[#allocation4 + $0x48] sm:$0xff]   ;;  %v1779_v46 = vld [vmem:[#allocation4 + $0x50] sm:$0xff]  }
  0x34   :  { %665 = vmatpush1.bf16.msra.mxu0 %v1636_v7  ;;  %v1776_v42 = vld [vmem:[#allocation4] sm:$0xff]   ;;  %1497 = vmatprep.subr.bf16.mxu1 %v1775_v41  ;;  %v1778_v45 = vld [vmem:[#allocation4 + $0x8] sm:$0xff]   ;;  %v1686_v48 = vld [vmem:[#allocation2 + $0x134] ss:$8 sps:$4 sm:$0xff]  }
  0x35   :  { %666 = vmatprep.subr.bf16.mxu0 %v1637_v8  ;;  %v1683_v44 = vld [vmem:[#allocation2 + $0x124] ss:$8 sps:$4 sm:$0xff]   ;;  %1498 = vmatpush3.bf16.msra.mxu1 %v1776_v42  ;;  %v1681_v47 = vld [vmem:[#allocation2 + $0x120] ss:$8 sps:$4 sm:$0xff]   ;;  %v1780_v49 = vld [vmem:[#allocation4 + $0x10] sm:$0xff]  }
  0x36   :  { %1499 = vmatprep.subr.bf16.mxu1 %v1777_v43  ;;  %v1781_v50 = vld [vmem:[#allocation4 + $0x58] sm:$0xff]   ;;  %v1689_v52 = vld [vmem:[#allocation2 + $0x144] ss:$8 sps:$4 sm:$0xff]   ;;  %v1687_v53 = vld [vmem:[#allocation2 + $0x140] ss:$8 sps:$4 sm:$0xff]  }
  0x37   :  { %v1684_v51 = vld [vmem:[#allocation2 + $0x130] ss:$8 sps:$4 sm:$0xff]   ;;  %v1783_v55 = vld [vmem:[#allocation4 + $0x60] sm:$0xff]   ;;  %v1692_v56 = vld [vmem:[#allocation2 + $0x154] ss:$8 sps:$4 sm:$0xff]  }
  0x38   :  { %667 = vmatpush1.bf16.msra.mxu0 %v1639_v9  ;;  %v1782_v54 = vld [vmem:[#allocation4 + $0x18] sm:$0xff]   ;;  %v1784_v57 = vld [vmem:[#allocation4 + $0x20] sm:$0xff]   ;;  %v1785_v58 = vld [vmem:[#allocation4 + $0x68] sm:$0xff]  }
  0x39   :  { %668 = vmatprep.subr.bf16.mxu0 %v1640_v10  ;;  %1500 = vmatpush3.bf16.msra.mxu1 %v1778_v45  ;;  %v1690_v59 = vld [vmem:[#allocation2 + $0x150] ss:$8 sps:$4 sm:$0xff]   ;;  %v1695_v60 = vld [vmem:[#allocation2 + $0x164] ss:$8 sps:$4 sm:$0xff]   ;;  %v1693_v62 = vld [vmem:[#allocation2 + $0x160] ss:$8 sps:$4 sm:$0xff]  }
  0x3a   :  { %1501 = vmatprep.subr.bf16.mxu1 %v1779_v46  ;;  %v1786_v61 = vld [vmem:[#allocation4 + $0x28] sm:$0xff]   ;;  %v1698_v63 = vld [vmem:[#allocation2 + $0x174] ss:$8 sps:$4 sm:$0xff]   ;;  %v1696_v0 = vld [vmem:[#allocation2 + $0x170] ss:$8 sps:$4 sm:$0xff]  }
  0x3b   :  { %v1701_v1 = vld [vmem:[#allocation2 + $0x184] ss:$8 sps:$4 sm:$0xff]   ;;  %v1699_v2 = vld [vmem:[#allocation2 + $0x180] ss:$8 sps:$4 sm:$0xff]   ;;  %v1704_v3 = vld [vmem:[#allocation2 + $0x194] ss:$8 sps:$4 sm:$0xff]  }
  0x3c   :  { %669 = vmatpush1.bf16.msra.mxu0 %v1642_v11  ;;  %v1702_v4 = vld [vmem:[#allocation2 + $0x190] ss:$8 sps:$4 sm:$0xff]   ;;  %v1707_v5 = vld [vmem:[#allocation2 + $0x1a4] ss:$8 sps:$4 sm:$0xff]   ;;  %v1705_v6 = vld [vmem:[#allocation2 + $0x1a0] ss:$8 sps:$4 sm:$0xff]  }
  0x3d   :  { %670 = vmatprep.subr.bf16.mxu0 %v1643_v12  ;;  %1502 = vmatpush3.bf16.msra.mxu1 %v1780_v49  ;;  %v1710_v7 = vld [vmem:[#allocation2 + $0x1b4] ss:$8 sps:$4 sm:$0xff]   ;;  %v1708_v8 = vld [vmem:[#allocation2 + $0x1b0] ss:$8 sps:$4 sm:$0xff]   ;;  %v1713_v9 = vld [vmem:[#allocation2 + $0x1c4] ss:$8 sps:$4 sm:$0xff]  }
  0x3e   :  { %1503 = vmatprep.subr.bf16.mxu1 %v1781_v50  ;;  %v1711_v10 = vld [vmem:[#allocation2 + $0x1c0] ss:$8 sps:$4 sm:$0xff]   ;;  %v1716_v11 = vld [vmem:[#allocation2 + $0x1d4] ss:$8 sps:$4 sm:$0xff]   ;;  %v1714_v12 = vld [vmem:[#allocation2 + $0x1d0] ss:$8 sps:$4 sm:$0xff]  }
  0x3f   :  { %v1719_v13 = vld [vmem:[#allocation2 + $0x1e4] ss:$8 sps:$4 sm:$0xff]   ;;  %v1717_v14 = vld [vmem:[#allocation2 + $0x1e0] ss:$8 sps:$4 sm:$0xff]   ;;  %v1760_v42 = vld [vmem:[#allocation2 + $0x2b4] ss:$8 sps:$4 sm:$0xff]  }
  0x40   :  { %671 = vmatpush1.bf16.msra.mxu0 %v1645_v15  ;;  %v1722_v15 = vld [vmem:[#allocation2 + $0x1f4] ss:$8 sps:$4 sm:$0xff]   ;;  %v1755_v41 = vld [vmem:[#allocation2 + $0x2a0] ss:$8 sps:$4 sm:$0xff]   ;;  %v1758_v43 = vld [vmem:[#allocation2 + $0x2b0] ss:$8 sps:$4 sm:$0xff]  }
  0x41   :  { %672 = vmatprep.subr.bf16.mxu0 %v1646_v16  ;;  %1504 = vmatpush3.bf16.msra.mxu1 %v1782_v54  ;;  %v1720_v16 = vld [vmem:[#allocation2 + $0x1f0] ss:$8 sps:$4 sm:$0xff]   ;;  %v1761_v45 = vld [vmem:[#allocation2 + $0x2c0] ss:$8 sps:$4 sm:$0xff]   ;;  %v1766_v46 = vld [vmem:[#allocation2 + $0x2d4] ss:$8 sps:$4 sm:$0xff]  }
  0x42   :  { %1505 = vmatprep.subr.bf16.mxu1 %v1783_v55  ;;  %v1767_v49 = vld [vmem:[#allocation2 + $0x2e0] ss:$8 sps:$4 sm:$0xff]   ;;  %v1772_v50 = vld [vmem:[#allocation2 + $0x2f4] ss:$8 sps:$4 sm:$0xff]  }
  0x43   :  { %v1788_v54 = vld [vmem:[#allocation4 + $0x30] sm:$0xff]   ;;  %v1789_v55 = vld [vmem:[#allocation4 + $0x78] sm:$0xff]  }
  0x44   :  { %673 = vmatpush1.bf16.msra.mxu0 %v1648_v17  ;;  %v1727_v17 = vld [vmem:[#allocation2 + $0x204] ss:$8 sps:$4 sm:$0xff]  }
  0x45   :  { %674 = vmatprep.subr.bf16.mxu0 %v1649_v18  ;;  %1506 = vmatpush3.bf16.msra.mxu1 %v1784_v57  ;;  %v1948_v18 = vld [vmem:[%s2032_s0 + $0x10] sm:$0xff]  ;;  %v1883_v57 = vmov 0.0  }
  0x46   :  { %1507 = vmatprep.subr.bf16.mxu1 %v1785_v58  ;;  %v147_v58 = vlaneseq }
  0x48   :  { %675 = vmatpush1.bf16.msra.mxu0 %v1651_v19  ;;  %v1354_v19 = vcombine.low %v1941_v35, %v1941_v35  ;;  %v1746_v35 = vld [vmem:[#allocation2 + $0x270] ss:$8 sps:$4 sm:$0xff]  }
  0x49   :  { %676 = vmatprep.subr.bf16.mxu0 %v1652_v20  ;;  %1508 = vmatpush3.bf16.msra.mxu1 %v1786_v61  ;;  %v1725_v20 = vld [vmem:[#allocation2 + $0x200] ss:$8 sps:$4 sm:$0xff]  }
  0x4a   :  { %v145_v61 = vld [vmem:[%s2035_s3] ss:$8 sm:$0x3] }
  0x4c   :  { %677 = vmatpush1.bf16.msra.mxu0 %v1654_v21  ;;  %v1357_v21 = vcombine.high %v1948_v18, %v1948_v18 }
  0x4d   :  { %678 = vmatprep.subr.bf16.mxu0 %v1655_v22  ;;  %v1730_v22 = vld [vmem:[#allocation2 + $0x214] ss:$8 sps:$4 sm:$0xff]  }
  0x50   :  { %679 = vmatpush1.bf16.msra.mxu0 %v1657_v23  ;;  %v1728_v23 = vld [vmem:[#allocation2 + $0x210] ss:$8 sps:$4 sm:$0xff]  }
  0x51   :  { %680 = vmatprep.subr.bf16.mxu0 %v1658_v24  ;;  %v1733_v24 = vld [vmem:[#allocation2 + $0x224] ss:$8 sps:$4 sm:$0xff]  }
  0x54   :  { %681 = vmatpush1.bf16.msra.mxu0 %v1660_v25  ;;  %v1731_v25 = vld [vmem:[#allocation2 + $0x220] ss:$8 sps:$4 sm:$0xff]  }
  0x55   :  { %682 = vmatprep.subr.bf16.mxu0 %v1661_v26  ;;  %v1736_v26 = vld [vmem:[#allocation2 + $0x234] ss:$8 sps:$4 sm:$0xff]  }
  0x58   :  { %683 = vmatpush1.bf16.msra.mxu0 %v1663_v27  ;;  %v1734_v27 = vld [vmem:[#allocation2 + $0x230] ss:$8 sps:$4 sm:$0xff]  }
  0x59   :  { %684 = vmatprep.subr.bf16.mxu0 %v1664_v28  ;;  %v1739_v28 = vld [vmem:[#allocation2 + $0x244] ss:$8 sps:$4 sm:$0xff]  }
  0x5c   :  { %685 = vmatpush1.bf16.msra.mxu0 %v1666_v29  ;;  %v1737_v29 = vld [vmem:[#allocation2 + $0x240] ss:$8 sps:$4 sm:$0xff]  }
  0x5d   :  { %686 = vmatprep.subr.bf16.mxu0 %v1667_v30  ;;  %v1742_v30 = vld [vmem:[#allocation2 + $0x254] ss:$8 sps:$4 sm:$0xff]  }
  0x60   :  { %687 = vmatpush1.bf16.msra.mxu0 %v1669_v31  ;;  %v1740_v31 = vld [vmem:[#allocation2 + $0x250] ss:$8 sps:$4 sm:$0xff]  }
  0x61   :  { %688 = vmatprep.subr.bf16.mxu0 %v1670_v32  ;;  %v1745_v32 = vld [vmem:[#allocation2 + $0x264] ss:$8 sps:$4 sm:$0xff]  }
  0x64   :  { %689 = vmatpush1.bf16.msra.mxu0 %v1672_v33  ;;  %v1743_v33 = vld [vmem:[#allocation2 + $0x260] ss:$8 sps:$4 sm:$0xff]  }
  0x65   :  { %699 = vmatprep.subr.bf16.mxu0 %v1677_v34  ;;  %v1748_v34 = vld [vmem:[#allocation2 + $0x274] ss:$8 sps:$4 sm:$0xff]  }
  0x67   :  { %691 = vmatmul.mubr.bf16.vlgmr.msra.gmra.mrb[0].mxu0 %v1352_v36  ;;  %v1751_v36 = vld [vmem:[#allocation2 + $0x284] ss:$8 sps:$4 sm:$0xff]  }
  0x68   :  { %700 = vmatpush1.bf16.msra.mxu0 %v1675_v37  ;;  %731 = vmatprep.mubr.bf16.mxu0 %v1355_v38  ;;  %v1749_v37 = vld [vmem:[#allocation2 + $0x280] ss:$8 sps:$4 sm:$0xff]   ;;  %v1754_v38 = vld [vmem:[#allocation2 + $0x294] ss:$8 sps:$4 sm:$0xff]  }
  0x69   :  { %701 = vmatprep.subr.bf16.mxu0 %v1680_v39  ;;  %v1752_v39 = vld [vmem:[#allocation2 + $0x290] ss:$8 sps:$4 sm:$0xff]  }
  0x6c   :  { %702 = vmatpush1.bf16.msra.mxu0 %v1678_v40  ;;  %v1757_v40 = vld [vmem:[#allocation2 + $0x2a4] ss:$8 sps:$4 sm:$0xff]  }
  0x6d   :  { %703 = vmatprep.subr.bf16.mxu0 %v1683_v44  ;;  %v1763_v44 = vld [vmem:[#allocation2 + $0x2c4] ss:$8 sps:$4 sm:$0xff]  }
  0x70   :  { %704 = vmatpush1.bf16.msra.mxu0 %v1681_v47  ;;  %v1764_v47 = vld [vmem:[#allocation2 + $0x2d0] ss:$8 sps:$4 sm:$0xff]  }
  0x71   :  { %705 = vmatprep.subr.bf16.mxu0 %v1686_v48  ;;  %v1769_v48 = vld [vmem:[#allocation2 + $0x2e4] ss:$8 sps:$4 sm:$0xff]  }
  0x74   :  { %706 = vmatpush1.bf16.msra.mxu0 %v1684_v51  ;;  %v1770_v51 = vld [vmem:[#allocation2 + $0x2f0] ss:$8 sps:$4 sm:$0xff]  }
  0x75   :  { %707 = vmatprep.subr.bf16.mxu0 %v1689_v52  ;;  %v1356_v52 = vcombine.low %v1948_v18, %v1948_v18  ;;  %v1798_v18 = vld [vmem:[#allocation4 + $0xb8] sm:$0xff]  }
  0x78   :  { %708 = vmatpush1.bf16.msra.mxu0 %v1687_v53  ;;  %v1787_v53 = vld [vmem:[#allocation4 + $0x70] sm:$0xff]  }
  0x79   :  { %709 = vmatprep.subr.bf16.mxu0 %v1692_v56  ;;  %1509 = vmatprep.subr.bf16.mxu1 %v1787_v53  ;;  %v1790_v56 = vld [vmem:[#allocation4 + $0x38] sm:$0xff]  }
  0x7a   :  { %1510 = vmatpush3.bf16.msra.mxu1 %v1788_v54 }
  0x7b   :  { %1511 = vmatprep.subr.bf16.mxu1 %v1789_v55 }
  0x7c   :  { %710 = vmatpush1.bf16.msra.mxu0 %v1690_v59  ;;  %v148_v59 = vshrl.u32 %v147_v58, 7 }
  0x7d   :  { %711 = vmatprep.subr.bf16.mxu0 %v1695_v60 }
  0x7e   :  { %1512 = vmatpush3.bf16.msra.mxu1 %v1790_v56  ;;  %v149_v60 = vsub.s32 0, %v148_v59 }
  0x7f   :  { %1546 = vmatprep.subr.bf16.mxu1 %v1883_v57 }
  0x80   :  { %712 = vmatpush1.bf16.msra.mxu0 %v1693_v62  ;;  %v153_v62 = vsub.s32 1, %v148_v59 }
  0x81   :  { %713 = vmatprep.subr.bf16.mxu0 %v1698_v63  ;;  %v150_v63 = vrot.slane %v145_v61, %v149_v60 }
  0x84   :  { %714 = vmatpush1.bf16.msra.mxu0 %v1696_v0  ;;  %v154_v0 = vrot.slane %v145_v61, %v153_v62 }
  0x85   :  { %715 = vmatprep.subr.bf16.mxu0 %v1701_v1 }
  0x88   :  { %716 = vmatpush1.bf16.msra.mxu0 %v1699_v2 }
  0x89   :  { %717 = vmatprep.subr.bf16.mxu0 %v1704_v3 }
  0x8c   :  { %718 = vmatpush1.bf16.msra.mxu0 %v1702_v4 }
  0x8d   :  { %719 = vmatprep.subr.bf16.mxu0 %v1707_v5 }
  0x90   :  { %720 = vmatpush1.bf16.msra.mxu0 %v1705_v6 }
  0x91   :  { %721 = vmatprep.subr.bf16.mxu0 %v1710_v7 }
  0x94   :  { %722 = vmatpush1.bf16.msra.mxu0 %v1708_v8 }
  0x95   :  { %723 = vmatprep.subr.bf16.mxu0 %v1713_v9 }
  0x98   :  { %724 = vmatpush1.bf16.msra.mxu0 %v1711_v10  ;;  %v1791_v10 = vld [vmem:[#allocation4 + $0x80] sm:$0xff]  }
  0x99   :  { %725 = vmatprep.subr.bf16.mxu0 %v1716_v11 }
  0x9c   :  { %726 = vmatpush1.bf16.msra.mxu0 %v1714_v12  ;;  %v1792_v12 = vld [vmem:[#allocation4 + $0x88] sm:$0xff]  }
  0x9d   :  { %727 = vmatprep.subr.bf16.mxu0 %v1719_v13  ;;  %v1793_v13 = vld [vmem:[#allocation4 + $0x90] sm:$0xff]  }
  0xa0   :  { %728 = vmatpush1.bf16.msra.mxu0 %v1717_v14  ;;  %v1794_v14 = vld [vmem:[#allocation4 + $0x98] sm:$0xff]  }
  0xa1   :  { %729 = vmatprep.subr.bf16.mxu0 %v1722_v15  ;;  %v1795_v15 = vld [vmem:[#allocation4 + $0xa0] sm:$0xff]  }
  0xa4   :  { %730 = vmatpush1.bf16.msra.mxu0 %v1720_v16  ;;  %v1796_v16 = vld [vmem:[#allocation4 + $0xa8] sm:$0xff]  }
  0xa5   :  { %740 = vmatprep.subr.bf16.mxu0 %v1727_v17  ;;  %v1797_v17 = vld [vmem:[#allocation4 + $0xb0] sm:$0xff]  }
  0xa7   :  { %732 = vmatmul.mubr.bf16.vlgmr.msra.gmra.mrb[0].mxu0 %v1354_v19 }
  0xa8   :  { %741 = vmatpush1.bf16.msra.mxu0 %v1725_v20  ;;  %772 = vmatprep.mubr.bf16.mxu0 %v1357_v21  ;;  %v817_v20 = vld [vmem:[%s2035_s3 + $0x1] ss:$0 sm:$0xff] }
  0xa9   :  { %742 = vmatprep.subr.bf16.mxu0 %v1730_v22 }
  0xac   :  { %743 = vmatpush1.bf16.msra.mxu0 %v1728_v23 }
  0xad   :  { %744 = vmatprep.subr.bf16.mxu0 %v1733_v24 }
  0xb0   :  { %745 = vmatpush1.bf16.msra.mxu0 %v1731_v25 }
  0xb1   :  { %746 = vmatprep.subr.bf16.mxu0 %v1736_v26 }
  0xb4   :  { %747 = vmatpush1.bf16.msra.mxu0 %v1734_v27  ;;  %v1799_v27 = vld [vmem:[#allocation4 + $0xc0] sm:$0xff]  }
  0xb5   :  { %748 = vmatprep.subr.bf16.mxu0 %v1739_v28 }
  0xb8   :  { %749 = vmatpush1.bf16.msra.mxu0 %v1737_v29  ;;  %v1800_v29 = vld [vmem:[#allocation4 + $0xc8] sm:$0xff]  }
  0xb9   :  { %750 = vmatprep.subr.bf16.mxu0 %v1742_v30  ;;  %v1801_v30 = vld [vmem:[#allocation4 + $0xd0] sm:$0xff]  }
  0xbc   :  { %751 = vmatpush1.bf16.msra.mxu0 %v1740_v31  ;;  %v1802_v31 = vld [vmem:[#allocation4 + $0xd8] sm:$0xff]  }
  0xbd   :  { %752 = vmatprep.subr.bf16.mxu0 %v1745_v32  ;;  %v1803_v32 = vld [vmem:[#allocation4 + $0xe0] sm:$0xff]  }
  0xc0   :  { %753 = vmatpush1.bf16.msra.mxu0 %v1743_v33  ;;  %v1804_v33 = vld [vmem:[#allocation4 + $0xe8] sm:$0xff]  }
  0xc1   :  { %754 = vmatprep.subr.bf16.mxu0 %v1748_v34  ;;  %v1805_v34 = vld [vmem:[#allocation4 + $0xf0] sm:$0xff]  }
  0xc4   :  { %755 = vmatpush1.bf16.msra.mxu0 %v1746_v35  ;;  %v1806_v35 = vld [vmem:[#allocation4 + $0xf8] sm:$0xff]  }
  0xc5   :  { %756 = vmatprep.subr.bf16.mxu0 %v1751_v36  ;;  %v972_v36 = vld [vmem:[%s2035_s3 + $0x2] ss:$0 sm:$0xff] }
  0xc8   :  { %757 = vmatpush1.bf16.msra.mxu0 %v1749_v37 }
  0xc9   :  { %758 = vmatprep.subr.bf16.mxu0 %v1754_v38 }
  0xcc   :  { %759 = vmatpush1.bf16.msra.mxu0 %v1752_v39 }
  0xcd   :  { %760 = vmatprep.subr.bf16.mxu0 %v1757_v40 }
  0xd0   :  { %761 = vmatpush1.bf16.msra.mxu0 %v1755_v41 }
  0xd1   :  { %762 = vmatprep.subr.bf16.mxu0 %v1760_v42 }
  0xd4   :  { %763 = vmatpush1.bf16.msra.mxu0 %v1758_v43  ;;  %v1807_v43 = vld [vmem:[#allocation4 + $0x100] sm:$0xff]  }
  0xd5   :  { %764 = vmatprep.subr.bf16.mxu0 %v1763_v44 }
  0xd8   :  { %765 = vmatpush1.bf16.msra.mxu0 %v1761_v45  ;;  %v1808_v45 = vld [vmem:[#allocation4 + $0x108] sm:$0xff]  }
  0xd9   :  { %766 = vmatprep.subr.bf16.mxu0 %v1766_v46  ;;  %v1809_v46 = vld [vmem:[#allocation4 + $0x110] sm:$0xff]  }
  0xdc   :  { %767 = vmatpush1.bf16.msra.mxu0 %v1764_v47  ;;  %v1810_v47 = vld [vmem:[#allocation4 + $0x118] sm:$0xff]  }
  0xdd   :  { %768 = vmatprep.subr.bf16.mxu0 %v1769_v48  ;;  %v1811_v48 = vld [vmem:[#allocation4 + $0x120] sm:$0xff]  }
  0xe0   :  { %769 = vmatpush1.bf16.msra.mxu0 %v1767_v49  ;;  %v1812_v49 = vld [vmem:[#allocation4 + $0x128] sm:$0xff]  }
  0xe1   :  { %770 = vmatprep.subr.bf16.mxu0 %v1772_v50  ;;  %v1813_v50 = vld [vmem:[#allocation4 + $0x130] sm:$0xff]  }
  0xe4   :  { %771 = vmatpush1.bf16.msra.mxu0 %v1770_v51  ;;  %v1814_v51 = vld [vmem:[#allocation4 + $0x138] sm:$0xff]  }
  0xe7   :  { %773 = vmatmul.mubr.bf16.vlgmr.msra.gmra.mrb[0].mxu0 %v1356_v52  ;;  %v1079_v52 = vld [vmem:[%s2035_s3 + $0x3] ss:$0 sm:$0xff] }
 0x1ba   :  { %v774_v1 = vpop.f32.mrb[0].mxu0 }
 0x1bb   :  { %v1606_v2 = vadd.f32 %v774_v1, %v150_v63  ;;  %v776_v3 = vpop.f32.mrb[1].mxu0 }
 0x1bc   :  { %v1607_v4 = vadd.f32 %v776_v3, %v154_v0  ;;  %v778_v5 = vpop.f32.mrb[2].mxu0 }
 0x1bd   :  { %v781_v6 = vmax.f32 %v1606_v2, 0.0  ;;  %v779_v7 = vpop.f32.mrb[3].mxu0  ;;  %v1184_v5 = vld [vmem:[%s2035_s3 + $0x4] ss:$0 sm:$0xff] }
 0x1be   :  { %v782_v8 = vmax.f32 %v1607_v4, 0.0 }
 0x1bf   :  { %v783_v11 = vpack.c.bf16 %v781_v6, %v781_v6 }
 0x1c0   :  { %v784_v9 = vpack.c.bf16 %v782_v8, %v782_v8 }
 0x1c2   :  { %946 = vmatprep.mubr.bf16.mxu1 %v784_v9 }
 0x1c3   :  { %947 = vmatmul.mubr.bf16.vlgmr.msra.gmra.mrb[0].mxu1 %v783_v11 }
 0x1c4   :  { %1547 = vmatpush3.bf16.msra.mxu1 %v1791_v10  ;;  %1562 = vmatprep.mubr.msk.bf16.mxu1 %vm1884_vm0, %v1883_v57 }
 0x1c5   :  { %1548 = vmatprep.subr.bf16.mxu1 %v1883_v57 }
 0x1c8   :  { %1549 = vmatpush3.bf16.msra.mxu1 %v1792_v12 }
 0x1c9   :  { %1550 = vmatprep.subr.bf16.mxu1 %v1883_v57 }
 0x1cc   :  { %1551 = vmatpush3.bf16.msra.mxu1 %v1793_v13 }
 0x1cd   :  { %1552 = vmatprep.subr.bf16.mxu1 %v1883_v57 }
 0x1d0   :  { %1553 = vmatpush3.bf16.msra.mxu1 %v1794_v14 }
 0x1d1   :  { %1554 = vmatprep.subr.bf16.mxu1 %v1883_v57 }
 0x1d4   :  { %1555 = vmatpush3.bf16.msra.mxu1 %v1795_v15 }
 0x1d5   :  { %1556 = vmatprep.subr.bf16.mxu1 %v1883_v57 }
 0x1d8   :  { %1557 = vmatpush3.bf16.msra.mxu1 %v1796_v16 }
 0x1d9   :  { %1558 = vmatprep.subr.bf16.mxu1 %v1883_v57 }
 0x1dc   :  { %1559 = vmatpush3.bf16.msra.mxu1 %v1797_v17 }
 0x1dd   :  { %1560 = vmatprep.subr.bf16.mxu1 %v1883_v57 }
 0x1e0   :  { %1561 = vmatpush3.bf16.msra.mxu1 %v1798_v18 }
 0x1e1   :  { %1566 = vmatprep.subr.bf16.mxu1 %v1883_v57 }
 0x296   :  { %v1513_v19 = vpop.f32.mrb[0].mxu1 }
 0x297   :  { %v1514_v21 = vpop.f32.mrb[1].mxu1 }
 0x298   :  { %v1515_v22 = vadd.f32 %v1514_v21, %v1513_v19  ;;  %v1516_v23 = vpop.f32.mrb[2].mxu1 }
 0x299   :  { %v1517_v24 = vpop.f32.mrb[3].mxu1 }
 0x29a   :  { %v949_v25 = vadd.f32 %v1515_v22, %v817_v20 }
 0x29c   :  { %v954_v26 = vmax.f32 %v949_v25, 0.0 }
 0x29e   :  { %v955_v28 = vpack.c.bf16 %v954_v26, %v954_v26 }
 0x2a0   :  { %1563 = vmatmul.mubr.bf16.vlgmr.msra.gmra.mrb[4].mxu1 %v955_v28 }
 0x2a1   :  { %1567 = vmatpush3.bf16.msra.mxu1 %v1799_v27  ;;  %1582 = vmatprep.mubr.msk.bf16.mxu1 %vm1884_vm0, %v1883_v57 }
 0x2a2   :  { %1568 = vmatprep.subr.bf16.mxu1 %v1883_v57 }
 0x2a5   :  { %1569 = vmatpush3.bf16.msra.mxu1 %v1800_v29 }
 0x2a6   :  { %1570 = vmatprep.subr.bf16.mxu1 %v1883_v57 }
 0x2a9   :  { %1571 = vmatpush3.bf16.msra.mxu1 %v1801_v30 }
 0x2aa   :  { %1572 = vmatprep.subr.bf16.mxu1 %v1883_v57 }
 0x2ad   :  { %1573 = vmatpush3.bf16.msra.mxu1 %v1802_v31 }
 0x2ae   :  { %1574 = vmatprep.subr.bf16.mxu1 %v1883_v57 }
 0x2b1   :  { %1575 = vmatpush3.bf16.msra.mxu1 %v1803_v32 }
 0x2b2   :  { %1576 = vmatprep.subr.bf16.mxu1 %v1883_v57 }
 0x2b5   :  { %1577 = vmatpush3.bf16.msra.mxu1 %v1804_v33 }
 0x2b6   :  { %1578 = vmatprep.subr.bf16.mxu1 %v1883_v57 }
 0x2b9   :  { %1579 = vmatpush3.bf16.msra.mxu1 %v1805_v34 }
 0x2ba   :  { %1580 = vmatprep.subr.bf16.mxu1 %v1883_v57 }
 0x2bd   :  { %1581 = vmatpush3.bf16.msra.mxu1 %v1806_v35 }
 0x2be   :  { %1586 = vmatprep.subr.bf16.mxu1 %v1883_v57 }
 0x373   :  { %v1055_v37 = vpop.f32.mrb[4].mxu1 }
 0x374   :  { %v1056_v38 = vadd.f32 %v1055_v37, %v972_v36  ;;  %v1564_v39 = vpop.f32.mrb[5].mxu1 }
 0x375   :  { %v1058_v40 = vpop.f32.mrb[6].mxu1 }
 0x376   :  { %v1061_v41 = vmax.f32 %v1056_v38, 0.0  ;;  %v1565_v42 = vpop.f32.mrb[7].mxu1 }
 0x378   :  { %v1062_v44 = vpack.c.bf16 %v1061_v41, %v1061_v41 }
 0x37a   :  { %1583 = vmatmul.mubr.bf16.vlgmr.msra.gmra.mrb[8].mxu1 %v1062_v44 }
 0x37b   :  { %1587 = vmatpush3.bf16.msra.mxu1 %v1807_v43  ;;  %1602 = vmatprep.mubr.msk.bf16.mxu1 %vm1884_vm0, %v1883_v57 }
 0x37c   :  { %1588 = vmatprep.subr.bf16.mxu1 %v1883_v57 }
 0x37f   :  { %1589 = vmatpush3.bf16.msra.mxu1 %v1808_v45 }
 0x380   :  { %1590 = vmatprep.subr.bf16.mxu1 %v1883_v57 }
 0x383   :  { %1591 = vmatpush3.bf16.msra.mxu1 %v1809_v46 }
 0x384   :  { %1592 = vmatprep.subr.bf16.mxu1 %v1883_v57 }
 0x387   :  { %1593 = vmatpush3.bf16.msra.mxu1 %v1810_v47 }
 0x388   :  { %1594 = vmatprep.subr.bf16.mxu1 %v1883_v57 }
 0x38b   :  { %1595 = vmatpush3.bf16.msra.mxu1 %v1811_v48 }
 0x38c   :  { %1596 = vmatprep.subr.bf16.mxu1 %v1883_v57 }
 0x38f   :  { %1597 = vmatpush3.bf16.msra.mxu1 %v1812_v49 }
 0x390   :  { %1598 = vmatprep.subr.bf16.mxu1 %v1883_v57 }
 0x393   :  { %1599 = vmatpush3.bf16.msra.mxu1 %v1813_v50 }
 0x394   :  { %1600 = vmatprep.subr.bf16.mxu1 %v1883_v57 }
 0x397   :  { %1601 = vmatpush3.bf16.msra.mxu1 %v1814_v51 }
 0x39a   :  { %1603 = vmatmul.mubr.bf16.vlgmr.msra.gmra.mrb[12].mxu1 %v1062_v44 }
 0x44d   :  { %v1162_v53 = vpop.f32.mrb[8].mxu1 }
 0x44e   :  { %v1163_v54 = vadd.f32 %v1162_v53, %v1079_v52  ;;  %v1584_v55 = vpop.f32.mrb[9].mxu1  ;;  %v1340_v53 = vand.u32 127, %v147_v58 }
 0x44f   :  { %v1165_v56 = vpop.f32.mrb[10].mxu1 }
 0x450   :  { %v1273_v59 = vand.u32 2147483647, %v1163_v54  ;;  %v1585_v60 = vpop.f32.mrb[11].mxu1  ;;  %v1282_v12 = vmax.f32 %v1163_v54, 0.0  ;;  %vm1281_vm2 = vcmp.gt.f32.partialorder %v1163_v54, 20.0  ;;  %vm1342_vm12 = vcmp.eq.s32.totalorder %v1340_v53, 1 }
 0x451   :  { %vm1341_vm13 = vcmp.eq.s32.totalorder %v1340_v53, 0 }
 0x452   :  { %v1283_v61 = vsub.f32 0.0, %v1273_v59  ;;  %v1274_v2 = vadd.f32 1.0, %v1273_v59 }
 0x454   :  { %v1284_v62 = vmul.f32 1.442695, %v1283_v61 }
 0x456   :  { %1815 = vpow2.f32 %v1284_v62 }
 0x460   :  { %v1816_v63 = vpop.eup %1815 }
 0x461   :  { %v1286_v0 = vadd.f32 1.0, %v1816_v63  ;;  %v1289_v1 = vmul.f32 -0.5, %v1816_v63  ;;  %v1292_v4 = vand.u32 2147483647, %v1816_v63 }
 0x463   :  { %1817 = vlog2.f32 %v1286_v0  ;;  %v1290_v3 = vadd.f32 1.0, %v1289_v1  ;;  %vm1293_vm1 = vcmp.lt.f32.partialorder %v1292_v4, 0.0004427343 }
 0x464   :  { %1819 = vrcp.f32 %v1274_v2 }
 0x465   :  { %v1291_v9 = vmul.f32 %v1816_v63, %v1290_v3 }
 0x46d   :  { %v1818_v6 = vpop.eup %1817  ;;  %v1267_v7 = vpop.f32.mrb[12].mxu1 }
 0x46e   :  { %v1288_v8 = vmul.f32 0.6931472, %v1818_v6  ;;  %v1268_v10 = vadd.f32 %v1267_v7, %v1184_v5  ;;  %v1604_v11 = vpop.f32.mrb[13].mxu1  ;;  %v1820_v20 = vpop.eup %1819 }
 0x46f   :  { %v1270_v13 = vpop.f32.mrb[14].mxu1  ;;  %v1276_v21 = vmul.f32 %v1820_v20, %v1163_v54 }
 0x470   :  { %v1294_v14 = vsel %vm1293_vm1, %v1291_v9, %v1288_v8  ;;  %v1277_v15 = vand.u32 2147483647, %v1268_v10  ;;  %v1605_v16 = vpop.f32.mrb[15].mxu1 }
 0x471   :  { %v1295_v17 = vadd.f32 %v1294_v14, %v1282_v12  ;;  %v1297_v24 = vand.u32 2147483647, %v1276_v21  ;;  %vm1333_vm14 = vcmp.lt.f32.partialorder %v1276_v21, 0.0 }
 0x472   :  { %v1278_v18 = vadd.f32 1.0, %v1277_v15 }
 0x473   :  { %v1296_v19 = vsel %vm1281_vm2, %v1163_v54, %v1295_v17  ;;  %vm2006_vm4 = vcmp.eq.f32.partialorder %v1297_v24, 0.0 }
 0x474   :  { %1821 = vrcp.f32 %v1278_v18  ;;  %v1343_v61 = vsel %vm1342_vm12, %v1296_v19, 0.0 }
 0x47e   :  { %v1822_v22 = vpop.eup %1821 }
 0x47f   :  { %v1280_v23 = vmul.f32 %v1822_v22, %v1268_v10 }
 0x481   :  { %v1298_v25 = vand.u32 2147483647, %v1280_v23  ;;  %vm1330_vm11 = vcmp.lt.f32.partialorder %v1280_v23, 0.0 }
 0x483   :  { %vm2002_vm3 = vcmp.eq.f32.partialorder %v1298_v25, 0.0 }
 0x484   :  { %v1300_v28 = vsel %vm2002_vm3, 1.0, %v1298_v25  ;;  %vm1337_vm5 = vmand %vm2002_vm3, %vm2006_vm4 }
 0x485   :  { %1823 = vrcp.f32 %v1300_v28 }
 0x48f   :  { %v1824_v29 = vpop.eup %1823 }
 0x490   :  { %v1302_v30 = vmul.f32 %v1824_v29, %v1297_v24 }
 0x492   :  { %vm1303_vm6 = vcmp.gt.f32.partialorder %v1302_v30, 2.4142137  ;;  %v1311_v31 = vadd.f32 1.0, %v1302_v30  ;;  %vm1305_vm9 = vcmp.gt.f32.partialorder %v1302_v30, 0.41421357  ;;  %v1494_v34 = vadd.f32 -1.0, %v1302_v30 }
 0x493   :  { %v1307_v32 = vsel %vm1303_vm6, %v1302_v30, 1.0  ;;  %vm1304_vm8 = vmxor %vm1303_vm6, %vm1885_vm7 }
 0x494   :  { %1825 = vrcp.f32 %v1307_v32  ;;  %vm1306_vm10 = vmand %vm1304_vm8, %vm1305_vm9 }
 0x495   :  { %1827 = vrcp.f32 %v1311_v31  ;;  %v1316_v48 = vsel %vm1306_vm10, 0.7853982, %v1883_v57 }
 0x496   :  { %v1317_v51 = vsel %vm1303_vm6, 1.5707964, %v1316_v48 }
 0x49e   :  { %v1826_v33 = vpop.eup %1825 }
 0x49f   :  { %v1828_v35 = vpop.eup %1827  ;;  %v1309_v36 = vmul.f32 -1.0, %v1826_v33 }
 0x4a0   :  { %v1313_v37 = vmul.f32 %v1828_v35, %v1494_v34 }
 0x4a2   :  { %v1314_v38 = vsel %vm1306_vm10, %v1313_v37, %v1302_v30 }
 0x4a3   :  { %v1315_v39 = vsel %vm1303_vm6, %v1309_v36, %v1314_v38 }
 0x4a4   :  { %v1318_v40 = vmul.f32 %v1315_v39, %v1315_v39 }
 0x4a6   :  { %v1319_v41 = vmul.f32 0.080537446, %v1318_v40 }
 0x4a8   :  { %v1495_v42 = vadd.f32 -0.13877685, %v1319_v41 }
 0x4aa   :  { %v1321_v43 = vmul.f32 %v1495_v42, %v1318_v40 }
 0x4ac   :  { %v1322_v44 = vadd.f32 0.19977711, %v1321_v43 }
 0x4ae   :  { %v1323_v45 = vmul.f32 %v1322_v44, %v1318_v40 }
 0x4b0   :  { %v1496_v46 = vadd.f32 -0.3333295, %v1323_v45 }
 0x4b2   :  { %v1325_v47 = vmul.f32 %v1496_v46, %v1318_v40 }
 0x4b4   :  { %v1326_v49 = vmul.f32 %v1325_v47, %v1315_v39 }
 0x4b6   :  { %v1327_v50 = vadd.f32 %v1326_v49, %v1315_v39 }
 0x4b8   :  { %v1328_v52 = vadd.f32 %v1327_v50, %v1317_v51 }
 0x4ba   :  { %v1329_v54 = vsel %vm2002_vm3, 1.5707964, %v1328_v52 }
 0x4bb   :  { %v1331_v55 = vsub.f32 3.1415927, %v1329_v54 }
 0x4bd   :  { %v1332_v56 = vsel %vm1330_vm11, %v1331_v55, %v1329_v54 }
 0x4be   :  { %v1334_v59 = vsub.f32 0.0, %v1332_v56 }
 0x4c0   :  { %v1335_v60 = vsel %vm1333_vm14, %v1334_v59, %v1332_v56 }
 0x4c1   :  { %v1338_v57 = vsel %vm1337_vm5, 0.0, %v1335_v60 }
 0x4c2   :  { %v1344_v62 = vsel %vm1341_vm13, %v1338_v57, %v1343_v61 }
 0x4c3   :  { %1345 = vst [vmem:[%s2036_s4] sm:$0xff] %v1344_v62 }
 0x4c4   :  { %1350 = vsyncpa [#allocation3], 1 }
 0x4c5   :  { %1351 = vsyncpa [#allocation5], 1 }

</bundles_post_ra>
